<compile_context>
chip_gen: v6e
topology: v6e:2x2x1
jax: 0.10.0
libtpu: 0.0.40
codegen_flags: <defaults>
</compile_context>

<pallas_src>
import jax
import jax.numpy as jnp
from jax.experimental import pallas as pl
from jax.experimental.pallas import tpu as pltpu

SUBLANE = 8  # f32 sublane width


def actor_kernel(x_ref, w1_ref, b1_ref, w2_ref, b2_ref, w3_ref, b3_ref, o_ref):
    # fc1 + relu (f32 operands, f32 MXU accumulation)
    h1 = jnp.dot(x_ref[...], w1_ref[...], preferred_element_type=jnp.float32)
    h1 = jnp.maximum(h1 + b1_ref[...], 0.0)
    # fc2 + relu
    h2 = jnp.dot(h1, w2_ref[...], preferred_element_type=jnp.float32)
    h2 = jnp.maximum(h2 + b2_ref[...], 0.0)
    # fc3 + tanh (output kept at real action width -> minimal writeback bytes)
    h3 = jnp.dot(h2, w3_ref[...], preferred_element_type=jnp.float32)
    o_ref[...] = jnp.tanh(h3 + b3_ref[...]).astype(o_ref.dtype)


def _batch_tile(batch):
    # Small batch: one full block (block dim == full array dim is always legal).
    # Larger batches: 256/512-row tiles so the grid has multiple steps
    # (pipelining + v7x dual-TensorCore sharding of the "parallel" axis).
    if batch <= 256:
        return batch
    if batch <= 1024:
        return 256
    return 512


@jax.jit
def actor_forward(x, w1, b1, w2, b2, w3, b3):
    batch, state_dim = x.shape
    action_dim = w3.shape[1]

    tb = _batch_tile(batch)
    grid = (pl.cdiv(batch, tb),)

    # Weights/biases: constant block index -> fetched once, VMEM-resident.
    resident = lambda a: pl.BlockSpec(a.shape, lambda i: (0, 0))

    # TODO(synk): for very large hidden_dim (>=2048) set vmem_limit_bytes and
    # single-buffer the resident weight specs (v7x has 64 MiB VMEM).
    return pl.pallas_call(
        actor_kernel,
        out_shape=jax.ShapeDtypeStruct((batch, action_dim), x.dtype),
        grid=grid,
        in_specs=[
            pl.BlockSpec((tb, state_dim), lambda i: (i, 0)),   # x: tiled over batch
            resident(w1), resident(b1),
            resident(w2), resident(b2),
            resident(w3), resident(b3),
        ],
        out_specs=pl.BlockSpec((tb, action_dim), lambda i: (i, 0)),
        compiler_params=pltpu.CompilerParams(
            dimension_semantics=("parallel",)),                 # megacore on v7x
    )(x, w1, b1, w2, b2, w3, b3)


def init_linear(key, fan_in, fan_out):
    # Mimic PyTorch nn.Linear default init: U(-1/sqrt(fan_in), 1/sqrt(fan_in)).
    kw, kb = jax.random.split(key)
    bound = 1.0 / jnp.sqrt(jnp.float32(fan_in))
    w = jax.random.uniform(kw, (fan_in, fan_out), jnp.float32, -bound, bound)
    b = jax.random.uniform(kb, (1, fan_out), jnp.float32, -bound, bound)
    return w, b


def ref_forward(x, w1, b1, w2, b2, w3, b3):
    hp = jax.lax.Precision.HIGHEST
    h1 = jnp.maximum(jnp.dot(x, w1, precision=hp) + b1, 0.0)
    h2 = jnp.maximum(jnp.dot(h1, w2, precision=hp) + b2, 0.0)
    return jnp.tanh(jnp.dot(h2, w3, precision=hp) + b3)


if __name__ == "__main__":
    state_dim, action_dim, hidden_dim = 16, 4, 64
    batch = 2

    key = jax.random.PRNGKey(0)
    kx, k1, k2, k3 = jax.random.split(key, 4)

    x = jax.random.normal(kx, (batch, state_dim), jnp.float32)
    w1, b1 = init_linear(k1, state_dim, hidden_dim)
    w2, b2 = init_linear(k2, hidden_dim, hidden_dim)
    w3, b3 = init_linear(k3, hidden_dim, action_dim)

    out = jax.block_until_ready(actor_forward(x, w1, b1, w2, b2, w3, b3))
    assert out.shape == (batch, action_dim)

    ref = ref_forward(x, w1, b1, w2, b2, w3, b3)
    err = float(jnp.max(jnp.abs(out - ref)))
    assert err < 1e-2, err

    # Also exercise the multi-step tiled path (partial last block + pipelining).
    batch2 = 600
    x2 = jax.random.normal(kx, (batch2, state_dim), jnp.float32)
    out2 = jax.block_until_ready(actor_forward(x2, w1, b1, w2, b2, w3, b3))
    ref2 = ref_forward(x2, w1, b1, w2, b2, w3, b3)
    err2 = float(jnp.max(jnp.abs(out2 - ref2)))
    assert out2.shape == (batch2, action_dim)
    assert err2 < 1e-2, err2

    print("KERNEL_OK")
</pallas_src>

<mosaic_0001>
module attributes {stable_mosaic.version = 11 : i64} {
  func.func @actor_kernel(%arg0: i32, %arg1: memref<2x16xf32, #tpu.memory_space<vmem>>, %arg2: memref<16x64xf32, #tpu.memory_space<vmem>>, %arg3: memref<1x64xf32, #tpu.memory_space<vmem>>, %arg4: memref<64x64xf32, #tpu.memory_space<vmem>>, %arg5: memref<1x64xf32, #tpu.memory_space<vmem>>, %arg6: memref<64x4xf32, #tpu.memory_space<vmem>>, %arg7: memref<1x4xf32, #tpu.memory_space<vmem>>, %arg8: memref<2x4xf32, #tpu.memory_space<vmem>>) attributes {dimension_semantics = [#tpu.dimension_semantics<parallel>], iteration_bounds = array<i64: 1>, scalar_prefetch = 0 : i64, scratch_operands = 0 : i64, tpu.core_type = #tpu.core_type<tc>, window_params = [{transform_indices = @transform_0, window_bounds = array<i64: 2, 16>}, {pipeline_mode = #tpu.pipeline_mode<synchronous>, transform_indices = @transform_1, window_bounds = array<i64: 16, 64>}, {pipeline_mode = #tpu.pipeline_mode<synchronous>, transform_indices = @transform_2, window_bounds = array<i64: 1, 64>}, {pipeline_mode = #tpu.pipeline_mode<synchronous>, transform_indices = @transform_3, window_bounds = array<i64: 64, 64>}, {pipeline_mode = #tpu.pipeline_mode<synchronous>, transform_indices = @transform_4, window_bounds = array<i64: 1, 64>}, {pipeline_mode = #tpu.pipeline_mode<synchronous>, transform_indices = @transform_5, window_bounds = array<i64: 64, 4>}, {pipeline_mode = #tpu.pipeline_mode<synchronous>, transform_indices = @transform_6, window_bounds = array<i64: 1, 4>}, {transform_indices = @transform_7, window_bounds = array<i64: 2, 4>}]} {
    %c0 = arith.constant 0 : index
    %c0_0 = arith.constant 0 : index
    %0 = vector.load %arg1[%c0, %c0_0] : memref<2x16xf32, #tpu.memory_space<vmem>>, vector<2x16xf32>
    %c0_1 = arith.constant 0 : index
    %c0_2 = arith.constant 0 : index
    %1 = vector.load %arg2[%c0_1, %c0_2] : memref<16x64xf32, #tpu.memory_space<vmem>>, vector<16x64xf32>
    %cst = arith.constant dense<0.000000e+00> : vector<2x64xf32>
    %2 = tpu.matmul %0, %1, %cst {dimension_numbers = #tpu.dot_dimension_numbers<[1], [0], [0], [1], [0, 0, 1, 1], [], []>} : vector<2x16xf32>, vector<16x64xf32>, vector<2x64xf32> -> vector<2x64xf32>
    %c0_3 = arith.constant 0 : index
    %c0_4 = arith.constant 0 : index
    %3 = vector.load %arg3[%c0_3, %c0_4] : memref<1x64xf32, #tpu.memory_space<vmem>>, vector<1x64xf32>
    %4 = vector.broadcast %3 : vector<1x64xf32> to vector<2x64xf32>
    %5 = arith.addf %2, %4 : vector<2x64xf32>
    %cst_5 = arith.constant 0.000000e+00 : f32
    %6 = vector.broadcast %cst_5 : f32 to vector<2x64xf32>
    %7 = arith.maximumf %5, %6 : vector<2x64xf32>
    %c0_6 = arith.constant 0 : index
    %c0_7 = arith.constant 0 : index
    %8 = vector.load %arg4[%c0_6, %c0_7] : memref<64x64xf32, #tpu.memory_space<vmem>>, vector<64x64xf32>
    %cst_8 = arith.constant dense<0.000000e+00> : vector<2x64xf32>
    %9 = tpu.matmul %7, %8, %cst_8 {dimension_numbers = #tpu.dot_dimension_numbers<[1], [0], [0], [1], [0, 0, 1, 1], [], []>} : vector<2x64xf32>, vector<64x64xf32>, vector<2x64xf32> -> vector<2x64xf32>
    %c0_9 = arith.constant 0 : index
    %c0_10 = arith.constant 0 : index
    %10 = vector.load %arg5[%c0_9, %c0_10] : memref<1x64xf32, #tpu.memory_space<vmem>>, vector<1x64xf32>
    %11 = vector.broadcast %10 : vector<1x64xf32> to vector<2x64xf32>
    %12 = arith.addf %9, %11 : vector<2x64xf32>
    %cst_11 = arith.constant 0.000000e+00 : f32
    %13 = vector.broadcast %cst_11 : f32 to vector<2x64xf32>
    %14 = arith.maximumf %12, %13 : vector<2x64xf32>
    %c0_12 = arith.constant 0 : index
    %c0_13 = arith.constant 0 : index
    %15 = vector.load %arg6[%c0_12, %c0_13] : memref<64x4xf32, #tpu.memory_space<vmem>>, vector<64x4xf32>
    %cst_14 = arith.constant dense<0.000000e+00> : vector<2x4xf32>
    %16 = tpu.matmul %14, %15, %cst_14 {dimension_numbers = #tpu.dot_dimension_numbers<[1], [0], [0], [1], [0, 0, 1, 1], [], []>} : vector<2x64xf32>, vector<64x4xf32>, vector<2x4xf32> -> vector<2x4xf32>
    %c0_15 = arith.constant 0 : index
    %c0_16 = arith.constant 0 : index
    %17 = vector.load %arg7[%c0_15, %c0_16] : memref<1x4xf32, #tpu.memory_space<vmem>>, vector<1x4xf32>
    %18 = vector.broadcast %17 : vector<1x4xf32> to vector<2x4xf32>
    %19 = arith.addf %16, %18 : vector<2x4xf32>
    %20 = math.tanh %19 : vector<2x4xf32>
    %c0_17 = arith.constant 0 : index
    %c0_18 = arith.constant 0 : index
    %21 = vector.load %arg8[%c0_17, %c0_18] : memref<2x4xf32, #tpu.memory_space<vmem>>, vector<2x4xf32>
    tpu.vector_store %arg8[%c0_17, %c0_18], %20 {strides = array<i32>} : memref<2x4xf32, #tpu.memory_space<vmem>>, vector<2x4xf32>,
    return
  }
  func.func @transform_0(%arg0: i32) -> (i32, i32) {
    %c0_i32 = arith.constant 0 : i32
    %c0_i32_0 = arith.constant 0 : i32
    return %arg0, %c0_i32 : i32, i32
  }
  func.func @transform_1(%arg0: i32) -> (i32, i32) {
    %c0_i32 = arith.constant 0 : i32
    %c0_i32_0 = arith.constant 0 : i32
    %c0_i32_1 = arith.constant 0 : i32
    return %c0_i32, %c0_i32_0 : i32, i32
  }
  func.func @transform_2(%arg0: i32) -> (i32, i32) {
    %c0_i32 = arith.constant 0 : i32
    %c0_i32_0 = arith.constant 0 : i32
    %c0_i32_1 = arith.constant 0 : i32
    return %c0_i32, %c0_i32_0 : i32, i32
  }
  func.func @transform_3(%arg0: i32) -> (i32, i32) {
    %c0_i32 = arith.constant 0 : i32
    %c0_i32_0 = arith.constant 0 : i32
    %c0_i32_1 = arith.constant 0 : i32
    return %c0_i32, %c0_i32_0 : i32, i32
  }
  func.func @transform_4(%arg0: i32) -> (i32, i32) {
    %c0_i32 = arith.constant 0 : i32
    %c0_i32_0 = arith.constant 0 : i32
    %c0_i32_1 = arith.constant 0 : i32
    return %c0_i32, %c0_i32_0 : i32, i32
  }
  func.func @transform_5(%arg0: i32) -> (i32, i32) {
    %c0_i32 = arith.constant 0 : i32
    %c0_i32_0 = arith.constant 0 : i32
    %c0_i32_1 = arith.constant 0 : i32
    return %c0_i32, %c0_i32_0 : i32, i32
  }
  func.func @transform_6(%arg0: i32) -> (i32, i32) {
    %c0_i32 = arith.constant 0 : i32
    %c0_i32_0 = arith.constant 0 : i32
    %c0_i32_1 = arith.constant 0 : i32
    return %c0_i32, %c0_i32_0 : i32, i32
  }
  func.func @transform_7(%arg0: i32) -> (i32, i32) {
    %c0_i32 = arith.constant 0 : i32
    %c0_i32_0 = arith.constant 0 : i32
    return %arg0, %c0_i32 : i32, i32
  }
}

</mosaic_0001>

<bundles_post_ra>
// kernel: actor_forward.1
= control target key start
LH: loop header
LB: loop body
LE: loop exit
PB: predicated region body
PF: predicated region fallthrough
CT: control target
= control target key end

     0   :  { %12 = vsyncpa [#allocation3], 0  ;;  %s584_s0 = inlined_call_operand.vmem [shape: f32[2,16], index: 0, kind: input, shape index: {}]   ;;  %s585_s1 = inlined_call_operand.hbm [shape: f32[16,64], index: 1, kind: input, shape index: {}]   ;;  %s586_s2 = inlined_call_operand.vmem [shape: f32[1,64], index: 2, kind: input, shape index: {}]   ;;  %s587_s3 = inlined_call_operand.vmem [shape: f32[64,64], index: 3, kind: input, shape index: {}]   ;;  %s588_s4 = inlined_call_operand.vmem [shape: f32[1,64], index: 4, kind: input, shape index: {}]   ;;  %s589_s5 = inlined_call_operand.vmem [shape: f32[64,4], index: 5, kind: input, shape index: {}]   ;;  %s590_s6 = inlined_call_operand.vmem [shape: f32[1,4], index: 6, kind: input, shape index: {}]   ;;  %s591_s7 = inlined_call_operand.hbm [shape: f32[2,4], index: 7, kind: output, shape index: {}]  }
   0x1   :  { %13 = vsyncpa [#allocation4], 0  ;;  %s446_s24 = smov [#allocation2]  }
   0x2   :  { %s21_s25 = sshll.u32 %s446_s24, 4  ;;  %s22_s25 = int_to_ptr.vmem [resolvable:$true] %s21_s25 }
   0x3   :  { %s410_s26 = scalar_lea.vmem %s22_s25, 256  ;;  %p415_p1 = scmp.lt.s32.totalorder %s22_s25, %s22_s25 }
   0x4   :  { %p411_p0 = scmp.ne.s32.totalorder %s22_s25, %s410_s26  ;;  %p416_p2 = scmp.lt.s32.totalorder %s410_s26, %s410_s26 }
   0x6   :  { %p417_p3 = por %p416_p2, %p415_p1 }
   0x8   :  { %p418_p4 = pnand %p417_p3, %p411_p0 }
   0xa   :  { %421 = shalt.err (!%p418_p4)
}
   0xb   :  { %s447_s27 = smov 128   ;;  %s448_s28 = smov 8  }
   0xc   :  { %27 = dma.hbm_to_vmem [thread:$0]  %s585_s1, 256, %s22_s25, [#allocation3], %s447_s27, %s447_s27, %s448_s28  }
   0xd   :  { %442 = dma.done.wait [#allocation3], 256  }
   0xe   :  { %443 = vsyncadd [#allocation3], 4294967040  ;;  %v449_v0 = vmov 0.0   ;;  %vm450_vm0 = vmmov 0   ;;  %v43_v1 = vld [vmem:[#allocation2 + $0x8] sm:$0xff]  ;;  %v42_v2 = vld [vmem:[#allocation2] sm:$0xff] }
   0xf   :  { %349 = vmatprep.subr.mxu0 %v449_v0  ;;  %353 = vmatprep.mubr.msk.f32.mxu0 %vm450_vm0, %v449_v0  ;;  %v41_v3 = vld [vmem:[%s584_s0] sm:$0x3]  ;;  %vm51_vm1 = vcmask 130048   ;;  %v133_v4 = vld [vmem:[%s587_s3 + $0x38] sm:$0xff]  ;;  %v132_v5 = vld [vmem:[%s587_s3 + $0x30] sm:$0xff]  ;;  %vm141_vm2 = vcmask 523264  }
  0x10   :  { %356 = vmatprep.subr.mxu1 %v449_v0  ;;  %372 = vmatprep.mubr.msk.f32.mxu1 %vm450_vm0, %v449_v0  ;;  %v131_v6 = vld [vmem:[%s587_s3 + $0x28] sm:$0xff]  ;;  %v130_v7 = vld [vmem:[%s587_s3 + $0x20] sm:$0xff]  ;;  %v129_v8 = vld [vmem:[%s587_s3 + $0x18] sm:$0xff]  ;;  %vm305_vm3 = vcmask 25600  }
  0x11   :  { %350 = vmatpush3.msra.mxu0 %v43_v1  ;;  %357 = vmatpush3.msra.mxu1 %v133_v4  ;;  %v128_v9 = vld [vmem:[%s587_s3 + $0x10] sm:$0xff]  ;;  %v127_v10 = vld [vmem:[%s587_s3 + $0x8] sm:$0xff]  ;;  %v126_v11 = vld [vmem:[%s587_s3] sm:$0xff] }
  0x12   :  { %351 = vmatprep.subr.mxu0 %v449_v0  ;;  %358 = vmatprep.subr.mxu1 %v449_v0  ;;  %v223_v12 = vld [vmem:[%s589_s5 + $0x38] sm:$0xff]  ;;  %v222_v13 = vld [vmem:[%s589_s5 + $0x30] sm:$0xff]  ;;  %v221_v14 = vld [vmem:[%s589_s5 + $0x28] sm:$0xff] }
  0x13   :  { %352 = vmatpush3.msra.mxu0 %v42_v2  ;;  %359 = vmatpush3.msra.mxu1 %v132_v5  ;;  %v220_v15 = vld [vmem:[%s589_s5 + $0x20] sm:$0xff]  ;;  %v219_v16 = vld [vmem:[%s589_s5 + $0x18] sm:$0xff]  ;;  %v218_v22 = vld [vmem:[%s589_s5 + $0x10] sm:$0xff] }
  0x14   :  { %354 = vmatmul.mubr.msk.f32.vlgmr.msra.gmra.mxu0 %vm51_vm1, %v41_v3  ;;  %360 = vmatprep.subr.mxu1 %v449_v0  ;;  %v322_v17 = vld [vmem:[%s586_s2] ss:$0 sm:$0xff]  ;;  %v217_v23 = vld [vmem:[%s589_s5 + $0x8] sm:$0xff] }
  0x15   :  { %375 = vmatprep.subr.mxu0 %v449_v0  ;;  %361 = vmatpush3.msra.mxu1 %v131_v6  ;;  %v216_v24 = vld [vmem:[%s589_s5] sm:$0xff]  ;;  %s451_s5 = smov [#allocation5]  }
  0x16   :  { %391 = vmatprep.mubr.msk.f32.mxu0 %vm450_vm0, %v449_v0  ;;  %362 = vmatprep.subr.mxu1 %v449_v0  ;;  %v324_v25 = vld [vmem:[%s588_s4] ss:$0 sm:$0xff]  ;;  %s313_s19 = sshll.u32 %s451_s5, 4  ;;  %s314_s19 = int_to_ptr.vmem [resolvable:$true] %s313_s19 }
  0x17   :  { %363 = vmatpush3.msra.mxu1 %v130_v7  ;;  %376 = vmatpush3.msra.mxu0 %v223_v12  ;;  %v326_v30 = vld [vmem:[%s590_s6] ss:$0 sm:$0xff]  ;;  %s422_s4 = scalar_lea.vmem %s314_s19, 32  ;;  %p427_p6 = scmp.lt.s32.totalorder %s314_s19, %s314_s19 }
  0x18   :  { %364 = vmatprep.subr.mxu1 %v449_v0  ;;  %377 = vmatprep.subr.mxu0 %v449_v0  ;;  %p423_p5 = scmp.ne.s32.totalorder %s314_s19, %s422_s4  ;;  %p428_p7 = scmp.lt.s32.totalorder %s422_s4, %s422_s4 }
  0x19   :  { %365 = vmatpush3.msra.mxu1 %v129_v8  ;;  %378 = vmatpush3.msra.mxu0 %v222_v13 }
  0x1a   :  { %366 = vmatprep.subr.mxu1 %v449_v0  ;;  %379 = vmatprep.subr.mxu0 %v449_v0  ;;  %p429_p8 = por %p428_p7, %p427_p6 }
  0x1b   :  { %367 = vmatpush3.msra.mxu1 %v128_v9  ;;  %380 = vmatpush3.msra.mxu0 %v221_v14 }
  0x1c   :  { %368 = vmatprep.subr.mxu1 %v449_v0  ;;  %381 = vmatprep.subr.mxu0 %v449_v0  ;;  %p430_p9 = pnand %p429_p8, %p423_p5 }
  0x1d   :  { %369 = vmatpush3.msra.mxu1 %v127_v10  ;;  %382 = vmatpush3.msra.mxu0 %v220_v15 }
  0x1e   :  { %370 = vmatprep.subr.mxu1 %v449_v0  ;;  %383 = vmatprep.subr.mxu0 %v449_v0 }
  0x1f   :  { %371 = vmatpush3.msra.mxu1 %v126_v11  ;;  %384 = vmatpush3.msra.mxu0 %v219_v16 }
  0x20   :  { %385 = vmatprep.subr.mxu0 %v449_v0 }
  0x21   :  { %386 = vmatpush3.msra.mxu0 %v218_v22 }
  0x22   :  { %387 = vmatprep.subr.mxu0 %v449_v0 }
  0x23   :  { %388 = vmatpush3.msra.mxu0 %v217_v23 }
  0x24   :  { %389 = vmatprep.subr.mxu0 %v449_v0 }
  0x25   :  { %390 = vmatpush3.msra.mxu0 %v216_v24 }
  0xd4   :  { %v121_v18 = vpop.f32.mrf.mxu0 }
  0xd5   :  { %v122_v19 = vadd.f32 %v322_v17, %v121_v18 }
  0xd6   :  { %v355_v20 = vpop.f32.mrf.mxu0 }
  0xd7   :  { %v125_v21 = vmax.f32 %v122_v19, 0.0 }
  0xd9   :  { %373 = vmatmul.mubr.msk.f32.vlgmr.msra.gmra.mxu1 %vm141_vm2, %v125_v21 }
 0x199   :  { %v211_v26 = vpop.f32.mrf.mxu1 }
 0x19a   :  { %v212_v27 = vadd.f32 %v324_v25, %v211_v26 }
 0x19b   :  { %v374_v28 = vpop.f32.mrf.mxu1 }
 0x19c   :  { %v215_v29 = vmax.f32 %v212_v27, 0.0 }
 0x19e   :  { %392 = vmatmul.mubr.msk.f32.vlgmr.msra.gmra.mxu0 %vm141_vm2, %v215_v29 }
 0x25e   :  { %v300_v31 = vpop.f32.mrf.mxu0 }
 0x25f   :  { %v301_v32 = vadd.f32 %v326_v30, %v300_v31 }
 0x260   :  { %v393_v33 = vpop.f32.mrf.mxu0 }
 0x261   :  { %400 = vtanh.f32 %v301_v32 }
 0x26e   :  { %v401_v34 = vpop.eup %400 }
 0x26f   :  { %306 = vst.msk [vmem:[#allocation5] sm:$0x3] %vm305_vm3, %v401_v34 }
 0x270   :  { %433 = shalt.err (!%p430_p9)
}
 0x271   :  { %316 = dma.vmem_to_hbm [thread:$0]  %s314_s19, 32, %s591_s7, [#allocation4]  }
 0x272   :  { %444 = dma.done.wait [#allocation4], 32  }
 0x273   :  { %445 = vsyncadd [#allocation4], 4294967264 }
 0x274   :  { %320 = vsyncpa [#allocation3], 1 }
 0x275   :  { %321 = vsyncpa [#allocation4], 1 }

</bundles_post_ra>
